<compile_context>
chip_gen: v5e
topology: v5e:2x2
jax: 0.10.0
libtpu: 0.0.40
codegen_flags: <defaults>
</compile_context>

<pallas_src>
import functools

import jax
import jax.numpy as jnp
from jax.experimental import pallas as pl
from jax.experimental.pallas import tpu as pltpu

_MIB = 1024 * 1024


def _round_up(x, m):
    return (x + m - 1) // m * m


def _ffn_hidden_dim(dim, hidden_dim, multiple_of, ffn_dim_multiplier):
    """Replicates FairScaleFFN.__init__ hidden_dim arithmetic."""
    hidden_dim = int(2 * hidden_dim / 3)
    if ffn_dim_multiplier is not None:
        hidden_dim = int(ffn_dim_multiplier * hidden_dim)
    hidden_dim = multiple_of * ((hidden_dim + multiple_of - 1) // multiple_of)
    return hidden_dim


def _vmem_capacity_bytes():
    """Physical per-core VMEM, with a conservative fallback if the query fails."""
    try:
        info = pltpu.get_tpu_info()
        cap = getattr(info, "vmem_capacity_bytes", None)
        if cap:
            return int(cap)
    except Exception:
        pass
    return 64 * _MIB  # conservative (v7x per-TC) fallback


def _device_kind():
    try:
        return jax.devices()[0].device_kind.lower()
    except Exception:
        return ""


def _vmem_estimate(tm, d_pad, block_h, x_itemsize, w_itemsize, out_itemsize):
    """Conservative per-core VMEM estimate for one grid step.

    Counts double-buffered x/out/w13/w2t blocks, the f32 accumulator scratch,
    and the materialized f32 intermediates h (tm, 2*block_h) and g (tm, block_h).
    """
    x_b = 2 * tm * d_pad * x_itemsize
    o_b = 2 * tm * d_pad * out_itemsize
    w13_b = 2 * d_pad * (2 * block_h) * w_itemsize
    w2_b = 2 * block_h * d_pad * w_itemsize
    acc_b = tm * d_pad * 4
    inter_b = tm * 3 * block_h * 4
    return x_b + o_b + w13_b + w2_b + acc_b + inter_b


def _select_tm(d_pad, block_h, x_itemsize, w_itemsize, out_itemsize, vmem_cap):
    """Generation-aware token tile: as large as the VMEM budget + roofline want."""
    kind = _device_kind()
    if ("v5e" in kind) or ("v5 lite" in kind) or ("v5lite" in kind):
        tm_max = 384  # v5e ridge ~240 FLOP/B: 256-384 is already compute-bound.
    elif vmem_cap <= 80 * _MIB:
        tm_max = 512  # v7x: 64 MiB/TC VMEM, ridge ~311 FLOP/B.
    else:
        tm_max = 1024  # v6e: ridge ~680 FLOP/B, 128 MiB VMEM.
    budget = max(vmem_cap - 12 * _MIB, 8 * _MIB)
    for tm in (1024, 768, 512, 384, 256, 128, 64, 32, 16):
        if tm > tm_max:
            continue
        if _vmem_estimate(tm, d_pad, block_h, x_itemsize, w_itemsize,
                          out_itemsize) <= budget:
            return tm
    return 16


def prepare_fairscale_ffn_weights(w1, w2, w3, *, block_h=None, weight_dtype=None):
    """One-time weight preparation (call once, outside the per-token hot path).

    w1, w3: (hidden, dim)  -- nn.Linear convention (out_features, in_features)
    w2:     (dim, hidden)
    weight_dtype: optionally cast weights (e.g. jnp.bfloat16 for real models;
      accumulation stays f32 in-kernel).

    Returns a dict with:
      w13: (D_p, 2*H_p)  -- per hidden-chunk interleaved [W1^T chunk | W3^T chunk]
      w2t: (H_p, D_p)    -- W2^T, padded
    """
    H, D = w1.shape
    assert w3.shape == (H, D) and w2.shape == (D, H)

    if weight_dtype is not None:
        w1 = w1.astype(weight_dtype)
        w2 = w2.astype(weight_dtype)
        w3 = w3.astype(weight_dtype)
    w_itemsize = jnp.dtype(w1.dtype).itemsize

    D_p = _round_up(D, 128)
    H128 = _round_up(H, 128)
    vmem_cap = _vmem_capacity_bytes()

    if block_h is None:
        # Weights-resident fast path: if the full padded weights fit comfortably
        # in VMEM, use a single hidden chunk (n_h == 1).  The weight index maps
        # are then grid-invariant, so Pallas DMAs them exactly once and they
        # stay resident across all token tiles.
        resident_budget = 24 * _MIB if vmem_cap <= 80 * _MIB else 48 * _MIB
        if 3 * D_p * H128 * w_itemsize <= resident_budget:
            block_h = H128
        else:
            # Streamed hidden dimension.
            block_h = 512
            if vmem_cap <= 80 * _MIB and D_p >= 2048:
                block_h = 256  # v7x-sized VMEM + large model: smaller weight chunks.

    block_h = max(128, _round_up(min(block_h, H128), 128))
    H_p = _round_up(H, block_h)

    def pad2(a, rows, cols):
        return jnp.pad(a, ((0, rows - a.shape[0]), (0, cols - a.shape[1])))

    w1t = pad2(jnp.transpose(w1), D_p, H_p)   # (D_p, H_p)
    w3t = pad2(jnp.transpose(w3), D_p, H_p)   # (D_p, H_p)
    w2t = pad2(jnp.transpose(w2), H_p, D_p)   # (H_p, D_p)

    nk = H_p // block_h
    # Interleave per-chunk so a single (D_p, 2*block_h) block holds the matching
    # W1 and W3 columns for that hidden chunk -> one fused matmul in-kernel.
    w13 = jnp.concatenate(
        [w1t.reshape(D_p, nk, block_h), w3t.reshape(D_p, nk, block_h)], axis=-1
    ).reshape(D_p, 2 * H_p)

    return {
        "w13": w13,
        "w2t": w2t,
        "dim": D,
        "hidden": H,
        "d_pad": D_p,
        "h_pad": H_p,
        "block_h": block_h,
    }


def _swiglu_ffn_kernel(x_ref, w13_ref, w2t_ref, o_ref, acc_ref, *, block_h):
    # x_ref:   (tm, D_p)            storage dtype
    # w13_ref: (D_p, 2*block_h)     [W1^T chunk | W3^T chunk], storage dtype
    # w2t_ref: (block_h, D_p)       W2^T chunk, storage dtype
    # o_ref:   (tm, D_p)
    # acc_ref: (tm, D_p) f32 accumulator across hidden chunks
    k = pl.program_id(1)

    @pl.when(k == 0)
    def _init():
        acc_ref[...] = jnp.zeros_like(acc_ref)

    # Fused gate+up projection: one wide matmul, f32 accumulation on the MXU.
    h = jnp.dot(x_ref[...], w13_ref[...], preferred_element_type=jnp.float32)
    h1 = h[:, :block_h]
    h3 = h[:, block_h:]

    # SiLU(h1) * h3 in f32 (sigmoid -> EUP, mul -> VPU).
    g = (h1 * jax.nn.sigmoid(h1)) * h3

    # Down projection in the weight's storage dtype (bf16 fast path for real
    # models); accumulate partial products in f32.
    acc_ref[...] += jnp.dot(
        g.astype(w2t_ref.dtype), w2t_ref[...], preferred_element_type=jnp.float32
    )

    @pl.when(k == pl.num_programs(1) - 1)
    def _store():
        o_ref[...] = acc_ref[...].astype(o_ref.dtype)


def fairscale_ffn_pallas(x, params, *, tm=None):
    """x: (..., dim); params: output of prepare_fairscale_ffn_weights."""
    D = params["dim"]
    H = params["hidden"]
    D_p = params["d_pad"]
    H_p = params["h_pad"]
    block_h = params["block_h"]
    w13 = params["w13"]
    w2t = params["w2t"]

    orig_shape = x.shape
    assert orig_shape[-1] == D
    x2d = x.reshape(-1, D)
    T = x2d.shape[0]

    x_itemsize = jnp.dtype(x.dtype).itemsize
    w_itemsize = jnp.dtype(w13.dtype).itemsize
    vmem_cap = _vmem_capacity_bytes()

    # Token tile: generation/VMEM-aware default; shrunk for tiny inputs.
    # Multiple of 16 so the same block shape works for f32 and packed bf16.
    if tm is None:
        tm = _select_tm(D_p, block_h, x_itemsize, w_itemsize, x_itemsize, vmem_cap)
    tm = _round_up(max(tm, 16), 16)
    tm_eff = min(tm, _round_up(T, 16))
    T_p = _round_up(T, tm_eff)

    x_p = x2d
    if T_p != T or D_p != D:
        x_p = jnp.pad(x2d, ((0, T_p - T), (0, D_p - D)))

    n_tok = T_p // tm_eff
    n_h = H_p // block_h

    kernel = functools.partial(_swiglu_ffn_kernel, block_h=block_h)

    cost = pl.CostEstimate(
        flops=6 * T_p * D * H,
        transcendentals=T_p * H,
        bytes_accessed=int(
            x_p.size * x_itemsize
            + T_p * D_p * x_itemsize
            + (1 if n_h == 1 else n_tok) * (w13.size + w2t.size) * w_itemsize
        ),
    )

    # VMEM budgeting: always set the scoped limit explicitly (v5e's default is
    # only 16 MiB) and clamp it below the device's physical per-core VMEM
    # (v7x: 64 MiB).  The estimate includes the f32 h/g intermediates.
    vmem_est = _vmem_estimate(tm_eff, D_p, block_h, x_itemsize, w_itemsize, x_itemsize)
    vmem_limit = int(min(max(vmem_est * 3 // 2, 32 * _MIB), vmem_cap - 8 * _MIB))
    vmem_limit = max(vmem_limit, 16 * _MIB)

    # TODO(synk): pipeline_mode=pl.Buffered(1) on the k-invariant x/out blocks
    # would reclaim ~tm*D_p*itemsize of VMEM on the streamed-hidden path; left
    # at the default double-buffering for maximum lowering portability.
    out_p = pl.pallas_call(
        kernel,
        out_shape=jax.ShapeDtypeStruct((T_p, D_p), x.dtype),
        grid_spec=pltpu.PrefetchScalarGridSpec(
            num_scalar_prefetch=0,
            grid=(n_tok, n_h),                      # reduction axis last
            in_specs=[
                pl.BlockSpec((tm_eff, D_p), lambda i, k: (i, 0)),       # x tile
                pl.BlockSpec((D_p, 2 * block_h), lambda i, k: (0, k)),  # fused W1|W3
                pl.BlockSpec((block_h, D_p), lambda i, k: (k, 0)),      # W2^T chunk
            ],
            out_specs=pl.BlockSpec((tm_eff, D_p), lambda i, k: (i, 0)),
            scratch_shapes=[pltpu.VMEM((tm_eff, D_p), jnp.float32)],
        ),
        compiler_params=pltpu.CompilerParams(
            dimension_semantics=("parallel", "arbitrary"),
            vmem_limit_bytes=vmem_limit,
        ),
        cost_estimate=cost,
    )(x_p, w13, w2t)

    out = out_p[:T, :D]
    return out.reshape(orig_shape)


def fairscale_ffn_reference(x, w1, w2, w3):
    prec = jax.lax.Precision.HIGHEST
    h1 = jnp.einsum("...d,hd->...h", x, w1, precision=prec)
    h3 = jnp.einsum("...d,hd->...h", x, w3, precision=prec)
    g = jax.nn.silu(h1) * h3
    return jnp.einsum("...h,dh->...d", g, w2, precision=prec)


if __name__ == "__main__":
    # Module config (small, but consistent with FairScaleFFN's arithmetic).
    dim = 64
    hidden_dim_arg = 128
    multiple_of = 32
    ffn_dim_multiplier = None
    hidden = _ffn_hidden_dim(dim, hidden_dim_arg, multiple_of, ffn_dim_multiplier)  # -> 96

    batch, seq = 2, 8   # 16 tokens total

    key = jax.random.PRNGKey(0)
    kx, k1, k2, k3 = jax.random.split(key, 4)
    x = jax.random.normal(kx, (batch, seq, dim), dtype=jnp.float32)
    # nn.Linear weight convention: (out_features, in_features)
    w1 = jax.random.normal(k1, (hidden, dim), dtype=jnp.float32) * (1.0 / dim ** 0.5)
    w2 = jax.random.normal(k2, (dim, hidden), dtype=jnp.float32) * (1.0 / hidden ** 0.5)
    w3 = jax.random.normal(k3, (hidden, dim), dtype=jnp.float32) * (1.0 / dim ** 0.5)

    ref = fairscale_ffn_reference(x, w1, w2, w3)

    # f32 path (matches the PyTorch module's dtype semantics).
    params_f32 = prepare_fairscale_ffn_weights(w1, w2, w3)   # one-time prep
    out = jax.block_until_ready(fairscale_ffn_pallas(x, params_f32))
    assert out.shape == ref.shape == (batch, seq, dim)
    assert jnp.allclose(out, ref, atol=3e-2, rtol=3e-2), "f32 mismatch vs reference"

    # bf16 fast path (bf16 MXU inputs, f32 accumulation) — looser tolerance.
    xb = x.astype(jnp.bfloat16)
    params_bf16 = prepare_fairscale_ffn_weights(w1, w2, w3, weight_dtype=jnp.bfloat16)
    out_b = jax.block_until_ready(fairscale_ffn_pallas(xb, params_bf16))
    assert out_b.dtype == jnp.bfloat16
    assert jnp.allclose(out_b.astype(jnp.float32), ref, atol=0.2, rtol=0.2), \
        "bf16 mismatch vs reference"

    print("KERNEL_OK")
</pallas_src>

<mosaic_0001>
module attributes {stable_mosaic.version = 11 : i64} {
  func.func @_swiglu_ffn_kernel(%arg0: i32, %arg1: i32, %arg2: memref<16x128xf32, #tpu.memory_space<vmem>>, %arg3: memref<128x256xf32, #tpu.memory_space<vmem>>, %arg4: memref<128x128xf32, #tpu.memory_space<vmem>>, %arg5: memref<16x128xf32, #tpu.memory_space<vmem>>, %arg6: memref<16x128xf32, #tpu.memory_space<vmem>>) attributes {dimension_semantics = [#tpu.dimension_semantics<parallel>, #tpu.dimension_semantics<arbitrary>], iteration_bounds = array<i64: 1, 1>, scalar_prefetch = 0 : i64, scratch_operands = 1 : i64, tpu.core_type = #tpu.core_type<tc>, window_params = [{transform_indices = @transform_0, window_bounds = array<i64: 16, 128>}, {transform_indices = @transform_1, window_bounds = array<i64: 128, 256>}, {transform_indices = @transform_2, window_bounds = array<i64: 128, 128>}, {transform_indices = @transform_3, window_bounds = array<i64: 16, 128>}]} {
    %c0_i32 = arith.constant 0 : i32
    %0 = arith.cmpi eq, %arg1, %c0_i32 : i32
    %1 = arith.extui %0 : i1 to i32
    %c0_i32_0 = arith.constant 0 : i32
    %2 = arith.cmpi ne, %1, %c0_i32_0 : i32
    scf.if %2 {
      %cst_14 = arith.constant 0.000000e+00 : f32
      %23 = vector.broadcast %cst_14 : f32 to vector<16x128xf32>
      %c0_15 = arith.constant 0 : index
      %c0_16 = arith.constant 0 : index
      %24 = vector.load %arg6[%c0_15, %c0_16] : memref<16x128xf32, #tpu.memory_space<vmem>>, vector<16x128xf32>
      tpu.vector_store %arg6[%c0_15, %c0_16], %23 {strides = array<i32>} : memref<16x128xf32, #tpu.memory_space<vmem>>, vector<16x128xf32>,
    } else {
    }
    %c0 = arith.constant 0 : index
    %c0_1 = arith.constant 0 : index
    %3 = vector.load %arg2[%c0, %c0_1] : memref<16x128xf32, #tpu.memory_space<vmem>>, vector<16x128xf32>
    %c0_2 = arith.constant 0 : index
    %c0_3 = arith.constant 0 : index
    %4 = vector.load %arg3[%c0_2, %c0_3] : memref<128x256xf32, #tpu.memory_space<vmem>>, vector<128x256xf32>
    %cst = arith.constant dense<0.000000e+00> : vector<16x256xf32>
    %5 = tpu.matmul %3, %4, %cst {dimension_numbers = #tpu.dot_dimension_numbers<[1], [0], [0], [1], [0, 0, 1, 1], [], []>} : vector<16x128xf32>, vector<128x256xf32>, vector<16x256xf32> -> vector<16x256xf32>
    %6 = vector.extract_strided_slice %5 {offsets = [0, 0], sizes = [16, 128], strides = [1, 1]} : vector<16x256xf32> to vector<16x128xf32>
    %7 = vector.extract_strided_slice %5 {offsets = [0, 128], sizes = [16, 128], strides = [1, 1]} : vector<16x256xf32> to vector<16x128xf32>
    %8 = arith.negf %6 : vector<16x128xf32>
    %9 = math.exp %8 : vector<16x128xf32>
    %cst_4 = arith.constant 1.000000e+00 : f32
    %10 = vector.broadcast %cst_4 : f32 to vector<16x128xf32>
    %11 = arith.addf %10, %9 : vector<16x128xf32>
    %12 = arith.divf %10, %11 : vector<16x128xf32>
    %13 = arith.mulf %6, %12 : vector<16x128xf32>
    %14 = arith.mulf %13, %7 : vector<16x128xf32>
    %c0_5 = arith.constant 0 : index
    %c0_6 = arith.constant 0 : index
    %15 = vector.load %arg6[%c0_5, %c0_6] : memref<16x128xf32, #tpu.memory_space<vmem>>, vector<16x128xf32>
    %c0_7 = arith.constant 0 : index
    %c0_8 = arith.constant 0 : index
    %16 = vector.load %arg4[%c0_7, %c0_8] : memref<128x128xf32, #tpu.memory_space<vmem>>, vector<128x128xf32>
    %cst_9 = arith.constant dense<0.000000e+00> : vector<16x128xf32>
    %17 = tpu.matmul %14, %16, %cst_9 {dimension_numbers = #tpu.dot_dimension_numbers<[1], [0], [0], [1], [0, 0, 1, 1], [], []>} : vector<16x128xf32>, vector<128x128xf32>, vector<16x128xf32> -> vector<16x128xf32>
    %18 = arith.addf %15, %17 : vector<16x128xf32>
    %c0_10 = arith.constant 0 : index
    %c0_11 = arith.constant 0 : index
    %19 = vector.load %arg6[%c0_10, %c0_11] : memref<16x128xf32, #tpu.memory_space<vmem>>, vector<16x128xf32>
    tpu.vector_store %arg6[%c0_10, %c0_11], %18 {strides = array<i32>} : memref<16x128xf32, #tpu.memory_space<vmem>>, vector<16x128xf32>,
    %c0_i32_12 = arith.constant 0 : i32
    %20 = arith.cmpi eq, %arg1, %c0_i32_12 : i32
    %21 = arith.extui %20 : i1 to i32
    %c0_i32_13 = arith.constant 0 : i32
    %22 = arith.cmpi ne, %21, %c0_i32_13 : i32
    scf.if %22 {
      %c0_14 = arith.constant 0 : index
      %c0_15 = arith.constant 0 : index
      %23 = vector.load %arg6[%c0_14, %c0_15] : memref<16x128xf32, #tpu.memory_space<vmem>>, vector<16x128xf32>
      %c0_16 = arith.constant 0 : index
      %c0_17 = arith.constant 0 : index
      %24 = vector.load %arg5[%c0_16, %c0_17] : memref<16x128xf32, #tpu.memory_space<vmem>>, vector<16x128xf32>
      tpu.vector_store %arg5[%c0_16, %c0_17], %23 {strides = array<i32>} : memref<16x128xf32, #tpu.memory_space<vmem>>, vector<16x128xf32>,
    } else {
    }
    return
  }
  func.func @transform_0(%arg0: i32, %arg1: i32) -> (i32, i32) {
    %c0_i32 = arith.constant 0 : i32
    %c0_i32_0 = arith.constant 0 : i32
    return %arg0, %c0_i32 : i32, i32
  }
  func.func @transform_1(%arg0: i32, %arg1: i32) -> (i32, i32) {
    %c0_i32 = arith.constant 0 : i32
    %c0_i32_0 = arith.constant 0 : i32
    return %c0_i32, %arg1 : i32, i32
  }
  func.func @transform_2(%arg0: i32, %arg1: i32) -> (i32, i32) {
    %c0_i32 = arith.constant 0 : i32
    %c0_i32_0 = arith.constant 0 : i32
    return %arg1, %c0_i32 : i32, i32
  }
  func.func @transform_3(%arg0: i32, %arg1: i32) -> (i32, i32) {
    %c0_i32 = arith.constant 0 : i32
    %c0_i32_0 = arith.constant 0 : i32
    return %arg0, %c0_i32 : i32, i32
  }
}

</mosaic_0001>

<bundles_post_ra>
// kernel: tpu_custom_call.1
= control target key start
LH: loop header
LB: loop body
LE: loop exit
PB: predicated region body
PF: predicated region fallthrough
CT: control target
= control target key end

     0   :  { %8 = vsyncpa [#allocation4], 0  ;;  %s447_s0 = inlined_call_operand.hbm [shape: f32[16,128], index: 0, kind: input, shape index: {}]   ;;  %s448_s1 = inlined_call_operand.hbm [shape: f32[128,256], index: 1, kind: input, shape index: {}]   ;;  %s449_s2 = inlined_call_operand.hbm [shape: f32[128,128], index: 2, kind: input, shape index: {}]   ;;  %s450_s3 = inlined_call_operand.hbm [shape: f32[16,128], index: 3, kind: output, shape index: {}]  }
   0x1   :  { %9 = vsyncpa [#allocation7], 0  ;;  %s28_s14 = sshll.u32 %s448_s1, 4  ;;  %s29_s14 = int_to_ptr.hbm [resolvable:$true] %s28_s14 }
   0x2   :  { %10 = vsyncpa [#allocation5], 0  ;;  %s398_s15 = smov [#allocation6]   ;;  %s15_s19 = sshll.u32 %s447_s0, 4  ;;  %s16_s19 = int_to_ptr.hbm [resolvable:$true] %s15_s19 }
   0x3   :  { %s30_s16 = sshll.u32 %s398_s15, 4  ;;  %s399_s20 = smov 256   ;;  %s31_s16 = int_to_ptr.vmem [resolvable:$true] %s30_s16 }
   0x4   :  { %s400_s21 = smov 16   ;;  %s401_s22 = smov [#allocation3]  }
   0x5   :  { %36 = dma.hbm_to_vmem [thread:$0]  %s29_s14, 4096, %s31_s16, [#allocation7], %s399_s20, %s399_s20, %s400_s21  }
   0x6   :  { %s17_s23 = sshll.u32 %s401_s22, 4  ;;  %s402_s24 = smov 128   ;;  %s18_s23 = int_to_ptr.vmem [resolvable:$true] %s17_s23 }
   0x7   :  { %s403_s25 = smov 8   ;;  %s41_s27 = sshll.u32 %s449_s2, 4  ;;  %s42_s27 = int_to_ptr.hbm [resolvable:$true] %s41_s27 }
   0x8   :  { %23 = dma.hbm_to_vmem [thread:$0]  %s16_s19, 256, %s18_s23, [#allocation4], %s402_s24, %s402_s24, %s403_s25  }
   0x9   :  { %s404_s28 = smov [#allocation8]  }
   0xa   :  { %s43_s0 = sshll.u32 %s404_s28, 4  ;;  %s44_s0 = int_to_ptr.vmem [resolvable:$true] %s43_s0 }
   0xb   :  { %49 = dma.hbm_to_vmem [thread:$0]  %s42_s27, 2048, %s44_s0, [#allocation7], %s402_s24, %s402_s24, %s403_s25  }
   0xc   :  { %392 = dma.done.wait [#allocation4], 256  }
   0xd   :  { %393 = vsyncadd [#allocation4], 4294967040 }
   0xe   :  { %394 = dma.done.wait [#allocation7], 6144  }
   0xf   :  { %395 = vsyncadd [#allocation7], 4294961152  ;;  %v100_v0 = vld [vmem:[#allocation6 + $0xf0] sm:$0xff]  ;;  %v98_v1 = vld [vmem:[#allocation6 + $0xe0] sm:$0xff]  ;;  %s405_s2 = smov [#allocation9]   ;;  %s248_s5 = sshll.u32 %s450_s3, 4  ;;  %s249_s5 = int_to_ptr.hbm [resolvable:$true] %s248_s5 }
  0x10   :  { %102 = vmatpush.msra.mxu0 %v100_v0  ;;  %264 = vmatpush.msra.mxu3 %v100_v0  ;;  %v96_v2 = vld [vmem:[#allocation6 + $0xd0] sm:$0xff]  ;;  %v94_v3 = vld [vmem:[#allocation6 + $0xc0] sm:$0xff]  ;;  %v101_v4 = vld [vmem:[#allocation6 + $0xf8] sm:$0xff]  ;;  %s246_s29 = sshll.u32 %s405_s2, 4  ;;  %s247_s29 = int_to_ptr.vmem [resolvable:$true] %s246_s29 }
  0x11   :  { %v99_v5 = vld [vmem:[#allocation6 + $0xe8] sm:$0xff]  ;;  %v92_v6 = vld [vmem:[#allocation6 + $0xb0] sm:$0xff]  ;;  %125 = vmatpush.msra.mxu1 %v101_v4  ;;  %v97_v7 = vld [vmem:[#allocation6 + $0xd8] sm:$0xff] }
  0x12   :  { %103 = vmatpush.msra.mxu0 %v98_v1  ;;  %265 = vmatpush.msra.mxu3 %v98_v1  ;;  %v90_v8 = vld [vmem:[#allocation6 + $0xa0] sm:$0xff]  ;;  %v95_v9 = vld [vmem:[#allocation6 + $0xc8] sm:$0xff]  ;;  %v88_v10 = vld [vmem:[#allocation6 + $0x90] sm:$0xff] }
  0x13   :  { %126 = vmatpush.msra.mxu1 %v99_v5  ;;  %v93_v11 = vld [vmem:[#allocation6 + $0xb8] sm:$0xff]  ;;  %v86_v12 = vld [vmem:[#allocation6 + $0x80] sm:$0xff]  ;;  %v91_v13 = vld [vmem:[#allocation6 + $0xa8] sm:$0xff] }
  0x14   :  { %104 = vmatpush.msra.mxu0 %v96_v2  ;;  %266 = vmatpush.msra.mxu3 %v96_v2  ;;  %v84_v14 = vld [vmem:[#allocation6 + $0x70] sm:$0xff]  ;;  %v89_v15 = vld [vmem:[#allocation6 + $0x98] sm:$0xff]  ;;  %v82_v16 = vld [vmem:[#allocation6 + $0x60] sm:$0xff] }
  0x15   :  { %127 = vmatpush.msra.mxu1 %v97_v7  ;;  %v87_v17 = vld [vmem:[#allocation6 + $0x88] sm:$0xff]  ;;  %v80_v18 = vld [vmem:[#allocation6 + $0x50] sm:$0xff]  ;;  %v85_v19 = vld [vmem:[#allocation6 + $0x78] sm:$0xff] }
  0x16   :  { %105 = vmatpush.msra.mxu0 %v94_v3  ;;  %267 = vmatpush.msra.mxu3 %v94_v3  ;;  %v78_v20 = vld [vmem:[#allocation6 + $0x40] sm:$0xff]  ;;  %v83_v21 = vld [vmem:[#allocation6 + $0x68] sm:$0xff]  ;;  %v76_v22 = vld [vmem:[#allocation6 + $0x30] sm:$0xff] }
  0x17   :  { %128 = vmatpush.msra.mxu1 %v95_v9  ;;  %v81_v23 = vld [vmem:[#allocation6 + $0x58] sm:$0xff]  ;;  %v74_v24 = vld [vmem:[#allocation6 + $0x20] sm:$0xff]  ;;  %v79_v25 = vld [vmem:[#allocation6 + $0x48] sm:$0xff] }
  0x18   :  { %106 = vmatpush.msra.mxu0 %v92_v6  ;;  %268 = vmatpush.msra.mxu3 %v92_v6  ;;  %v72_v26 = vld [vmem:[#allocation6 + $0x10] sm:$0xff]  ;;  %v77_v27 = vld [vmem:[#allocation6 + $0x38] sm:$0xff]  ;;  %v70_v28 = vld [vmem:[#allocation6] sm:$0xff] }
  0x19   :  { %129 = vmatpush.msra.mxu1 %v93_v11  ;;  %v68_v29 = vld [vmem:[#allocation3] sm:$0xff]  ;;  %v69_v30 = vld [vmem:[#allocation3 + $0x8] sm:$0xff]  ;;  %v75_v31 = vld [vmem:[#allocation6 + $0x28] sm:$0xff] }
  0x1a   :  { %107 = vmatpush.msra.mxu0 %v90_v8  ;;  %269 = vmatpush.msra.mxu3 %v90_v8  ;;  %v73_v32 = vld [vmem:[#allocation6 + $0x18] sm:$0xff]  ;;  %v71_v33 = vld [vmem:[#allocation6 + $0x8] sm:$0xff]  ;;  %v206_v35 = vld [vmem:[#allocation8 + $0x70] sm:$0xff] }
  0x1b   :  { %130 = vmatpush.msra.mxu1 %v91_v13  ;;  %v207_v34 = vld [vmem:[#allocation8 + $0x78] sm:$0xff]  ;;  %v205_v36 = vld [vmem:[#allocation8 + $0x68] sm:$0xff]  ;;  %v204_v37 = vld [vmem:[#allocation8 + $0x60] sm:$0xff] }
  0x1c   :  { %108 = vmatpush.msra.mxu0 %v88_v10  ;;  %270 = vmatpush.msra.mxu3 %v88_v10  ;;  %v203_v38 = vld [vmem:[#allocation8 + $0x58] sm:$0xff]  ;;  %v202_v39 = vld [vmem:[#allocation8 + $0x50] sm:$0xff]  ;;  %v201_v40 = vld [vmem:[#allocation8 + $0x48] sm:$0xff] }
  0x1d   :  { %131 = vmatpush.msra.mxu1 %v89_v15  ;;  %208 = vmatpush.msra.mxu2 %v207_v34  ;;  %v200_v41 = vld [vmem:[#allocation8 + $0x40] sm:$0xff]  ;;  %v199_v42 = vld [vmem:[#allocation8 + $0x38] sm:$0xff]  ;;  %v198_v43 = vld [vmem:[#allocation8 + $0x30] sm:$0xff] }
  0x1e   :  { %109 = vmatpush.msra.mxu0 %v86_v12  ;;  %271 = vmatpush.msra.mxu3 %v86_v12  ;;  %v197_v44 = vld [vmem:[#allocation8 + $0x28] sm:$0xff]  ;;  %v196_v45 = vld [vmem:[#allocation8 + $0x20] sm:$0xff]  ;;  %v195_v46 = vld [vmem:[#allocation8 + $0x18] sm:$0xff] }
  0x1f   :  { %132 = vmatpush.msra.mxu1 %v87_v17  ;;  %209 = vmatpush.msra.mxu2 %v206_v35  ;;  %v194_v47 = vld [vmem:[#allocation8 + $0x10] sm:$0xff]  ;;  %v193_v48 = vld [vmem:[#allocation8 + $0x8] sm:$0xff]  ;;  %v192_v49 = vld [vmem:[#allocation8] sm:$0xff] }
  0x20   :  { %110 = vmatpush.msra.mxu0 %v84_v14  ;;  %272 = vmatpush.msra.mxu3 %v84_v14 }
  0x21   :  { %133 = vmatpush.msra.mxu1 %v85_v19  ;;  %210 = vmatpush.msra.mxu2 %v205_v36 }
  0x22   :  { %111 = vmatpush.msra.mxu0 %v82_v16  ;;  %273 = vmatpush.msra.mxu3 %v82_v16 }
  0x23   :  { %134 = vmatpush.msra.mxu1 %v83_v21  ;;  %211 = vmatpush.msra.mxu2 %v204_v37 }
  0x24   :  { %112 = vmatpush.msra.mxu0 %v80_v18  ;;  %274 = vmatpush.msra.mxu3 %v80_v18 }
  0x25   :  { %135 = vmatpush.msra.mxu1 %v81_v23  ;;  %212 = vmatpush.msra.mxu2 %v203_v38 }
  0x26   :  { %113 = vmatpush.msra.mxu0 %v78_v20  ;;  %275 = vmatpush.msra.mxu3 %v78_v20 }
  0x27   :  { %136 = vmatpush.msra.mxu1 %v79_v25  ;;  %213 = vmatpush.msra.mxu2 %v202_v39 }
  0x28   :  { %114 = vmatpush.msra.mxu0 %v76_v22  ;;  %276 = vmatpush.msra.mxu3 %v76_v22 }
  0x29   :  { %137 = vmatpush.msra.mxu1 %v77_v27  ;;  %214 = vmatpush.msra.mxu2 %v201_v40 }
  0x2a   :  { %115 = vmatpush.msra.mxu0 %v74_v24  ;;  %277 = vmatpush.msra.mxu3 %v74_v24 }
  0x2b   :  { %138 = vmatpush.msra.mxu1 %v75_v31  ;;  %215 = vmatpush.msra.mxu2 %v200_v41 }
  0x2c   :  { %116 = vmatpush.msra.mxu0 %v72_v26  ;;  %278 = vmatpush.msra.mxu3 %v72_v26 }
  0x2d   :  { %139 = vmatpush.msra.mxu1 %v73_v32  ;;  %216 = vmatpush.msra.mxu2 %v199_v42 }
  0x2e   :  { %117 = vmatpush.msra.mxu0 %v70_v28  ;;  %279 = vmatpush.msra.mxu3 %v70_v28 }
  0x2f   :  { %118 = vmatmul.f32.vlgmr.msra.gmra.mxu0 %v68_v29  ;;  %121 = vmatmul.f32.vlgmr.msra.gmra.mxu3 %v69_v30 }
  0x30   :  { %140 = vmatpush.msra.mxu1 %v71_v33  ;;  %217 = vmatpush.msra.mxu2 %v198_v43 }
  0x31   :  { %141 = vmatmul.f32.vlgmr.msra.gmra.mxu1 %v68_v29 }
  0x32   :  { %218 = vmatpush.msra.mxu2 %v197_v44 }
  0x34   :  { %219 = vmatpush.msra.mxu2 %v196_v45 }
  0x36   :  { %220 = vmatpush.msra.mxu2 %v195_v46 }
  0x38   :  { %221 = vmatpush.msra.mxu2 %v194_v47 }
  0x39   :  { %144 = vmatmul.f32.gmra.mxu1 %v69_v30 }
  0x3a   :  { %222 = vmatpush.msra.mxu2 %v193_v48 }
  0x3c   :  { %223 = vmatpush.msra.mxu2 %v192_v49 }
  0xac   :  { %v119_v50 = vpop.f32.mrf.mxu0 }
  0xad   :  { %v262_v51 = vmul.f32 -1.442695, %v119_v50 }
  0xae   :  { %v142_v4 = vpop.f32.mrf.mxu1 }
  0xaf   :  { %288 = vpow2.f32 %v262_v51 }
  0xb2   :  { %v122_v52 = vpop.f32.mrf.mxu3 }
  0xb3   :  { %v263_v53 = vmul.f32 -1.442695, %v122_v52 }
  0xb5   :  { %v289_v54 = vpop.eup %288  ;;  %290 = vpow2.f32 %v263_v53 }
  0xb6   :  { %v154_v55 = vadd.f32 1.0, %v289_v54  ;;  %v145_v18 = vpop.f32.mrf.mxu1 }
  0xb8   :  { %292 = vrcp.f32 %v154_v55  ;;  %v167_v61 = vand.u32 2147483648, %v154_v55  ;;  %v165_v63 = vand.u32 2147483647, %v154_v55  ;;  %vm161_vm1 = vweird.f32 %v154_v55 }
  0xba   :  { %v168_v3 = vor.u32 1.1754944e-38, %v167_v61  ;;  %vm166_vm3 = vcmp.eq.f32.partialorder %v165_v63, 8.507059e+37 }
  0xbb   :  { %v291_v56 = vpop.eup %290 }
  0xbc   :  { %v155_v57 = vadd.f32 1.0, %v291_v56 }
  0xbe   :  { %v293_v58 = vpop.eup %292  ;;  %294 = vrcp.f32 %v155_v57  ;;  %v182_v8 = vand.u32 2147483648, %v155_v57  ;;  %v180_v11 = vand.u32 2147483647, %v155_v57  ;;  %vm176_vm5 = vweird.f32 %v155_v57 }
  0xbf   :  { %v157_v59 = vmul.f32 %v293_v58, %v154_v55  ;;  %vm162_vm0 = vweird.f32 %v293_v58 }
  0xc0   :  { %vm163_vm2 = vmor %vm161_vm1, %vm162_vm0  ;;  %v183_v14 = vor.u32 1.1754944e-38, %v182_v8  ;;  %vm181_vm7 = vcmp.eq.f32.partialorder %v180_v11, 8.507059e+37 }
  0xc1   :  { %v158_v60 = vsub.f32 1.0, %v157_v59 }
  0xc3   :  { %v159_v62 = vmul.f32 %v293_v58, %v158_v60 }
  0xc4   :  { %v295_v0 = vpop.eup %294 }
  0xc5   :  { %v160_v1 = vadd.f32 %v293_v58, %v159_v62  ;;  %v172_v2 = vmul.f32 %v295_v0, %v155_v57  ;;  %vm177_vm4 = vweird.f32 %v295_v0 }
  0xc6   :  { %vm178_vm6 = vmor %vm176_vm5, %vm177_vm4 }
  0xc7   :  { %v164_v5 = vsel %vm163_vm2, %v293_v58, %v160_v1  ;;  %v173_v6 = vsub.f32 1.0, %v172_v2 }
  0xc8   :  { %v169_v7 = vsel %vm166_vm3, %v168_v3, %v164_v5 }
  0xc9   :  { %v186_v9 = vmul.f32 %v169_v7, %v119_v50  ;;  %v174_v10 = vmul.f32 %v295_v0, %v173_v6 }
  0xcb   :  { %v175_v12 = vadd.f32 %v295_v0, %v174_v10  ;;  %v188_v13 = vmul.f32 %v186_v9, %v142_v4 }
  0xcd   :  { %v179_v15 = vsel %vm178_vm6, %v295_v0, %v175_v12  ;;  %224 = vmatmul.f32.vlgmr.msra.gmra.mxu2 %v188_v13 }
  0xce   :  { %v184_v16 = vsel %vm181_vm7, %v183_v14, %v179_v15 }
  0xcf   :  { %v187_v17 = vmul.f32 %v184_v16, %v122_v52 }
  0xd1   :  { %v189_v19 = vmul.f32 %v187_v17, %v145_v18 }
  0xd5   :  { %227 = vmatmul.f32.gmra.mxu2 %v189_v19 }
 0x150   :  { %v225_v20 = vpop.f32.mrf.mxu2 }
 0x151   :  { %240 = vst [vmem:[#allocation9] sm:$0xff] %v225_v20 }
 0x158   :  { %v228_v21 = vpop.f32.mrf.mxu2 }
 0x159   :  { %241 = vst [vmem:[#allocation9 + $0x8] sm:$0xff] %v228_v21 }
 0x15a   :  { %254 = dma.vmem_to_hbm [thread:$0]  %s247_s29, 256, %s249_s5, [#allocation5], %s402_s24, %s402_s24, %s403_s25  }
 0x15b   :  { %396 = dma.done.wait [#allocation5], 256  }
 0x15c   :  { %397 = vsyncadd [#allocation5], 4294967040 }
 0x15d   :  { %259 = vsyncpa [#allocation4], 1 }
 0x15e   :  { %260 = vsyncpa [#allocation7], 1 }
 0x15f   :  { %261 = vsyncpa [#allocation5], 1 }

</bundles_post_ra>
